<compile_context>
chip_gen: v7x
topology: tpu7x:2x2x1
jax: 0.10.0
libtpu: 0.0.40
codegen_flags: <defaults>
</compile_context>

<pallas_src>
import jax
import jax.numpy as jnp
from jax.experimental import pallas as pl
from jax.experimental.pallas import tpu as pltpu


def _round_up(n, m):
    return ((n + m - 1) // m) * m


def critic_kernel(x_ref, w1_ref, b1_ref, w2_ref, b2_ref, o_ref):
    # Layer 1 on the MXU: (tb, D) @ (D, H) -> (tb, H); bf16 operands, f32 acc.
    # x is cast to bf16 here (cheap per-tile VPU cast) instead of a separate
    # wrapper pass over all of x in HBM.
    h = jnp.dot(x_ref[...].astype(jnp.bfloat16), w1_ref[...],
                preferred_element_type=jnp.float32)
    # Bias-add + ReLU on the VPU in f32 (safe on v5e: no bf16 VPU there).
    h = jnp.maximum(h + b1_ref[...], 0.0)
    # Layer 2 (out_features == 1): VPU multiply + lane (XLU) reduce; keeps the
    # MXU free of a degenerate N=1 matmul and lowers robustly.
    v = jnp.sum(h * w2_ref[...], axis=1, keepdims=True) + b2_ref[0, 0]
    o_ref[...] = v.astype(o_ref.dtype)


def critic_forward(x, w1, b1, w2, b2, *, block_b=2048):
    """x: (B, D); w1: (D, H); b1: (1, H); w2: (H, 1); b2: (1, 1) -> (B, 1)."""
    B, D = x.shape
    H = w1.shape[1]
    f32 = jnp.float32

    # Batch tiling in natural (B, D) layout (batch on sublanes).  A single
    # full-extent tile needs no alignment; multi-tile batches need tb % 8 == 0
    # and tb is chosen so b_pad barely overshoots B (avoids dead-padding DMA).
    if B <= block_b:
        tb, num_tiles = B, 1
    else:
        num_tiles = -(-B // block_b)                 # ceil(B / block_b)
        tb = _round_up(-(-B // num_tiles), 8)        # even split, sublane-aligned
    b_pad = tb * num_tiles

    x_in = x
    if b_pad != B:
        x_in = jnp.pad(x, ((0, b_pad - B), (0, 0)))

    # Small resident operands (one-time wrapper cost, negligible next to x).
    # W1 pre-cast to bf16 so the kernel doesn't re-cast it every grid step.
    w1_bf = w1.astype(jnp.bfloat16)                  # (D, H)   resident
    b1_row = b1.reshape(1, H).astype(f32)            # (1, H)   resident
    w2_row = w2.reshape(1, H).astype(f32)            # (1, H)   resident
    b2_s = b2.reshape(1, 1).astype(f32)              # scalar in SMEM

    bytes_accessed = (x_in.size * x_in.dtype.itemsize   # streamed x
                      + w1_bf.size * 2                   # resident W1 (bf16)
                      + (2 * H + 1) * 4                  # b1, w2, b2
                      + b_pad * 4)                       # output
    cost = pl.CostEstimate(flops=2 * b_pad * H * (D + 1),
                           transcendentals=0,
                           bytes_accessed=int(bytes_accessed))

    out = pl.pallas_call(
        critic_kernel,
        out_shape=jax.ShapeDtypeStruct((b_pad, 1), f32),
        grid=(num_tiles,),
        in_specs=[
            pl.BlockSpec((tb, D), lambda i: (i, 0)),        # streamed x tile
            pl.BlockSpec((D, H), lambda i: (0, 0)),         # resident W1 (bf16)
            pl.BlockSpec((1, H), lambda i: (0, 0)),         # resident b1
            pl.BlockSpec((1, H), lambda i: (0, 0)),         # resident w2 row
            pl.BlockSpec(memory_space=pltpu.MemorySpace.SMEM),  # scalar b2
        ],
        out_specs=pl.BlockSpec((tb, 1), lambda i: (i, 0)),
        compiler_params=pltpu.CompilerParams(
            # Batch tiles are independent -> shards across both TCs on v7x
            # whenever num_tiles >= 2 (tiny single-tile batches use one core).
            dimension_semantics=("parallel",),
        ),
        cost_estimate=cost,
    )(x_in, w1_bf, b1_row, w2_row, b2_s)

    return out[:B].astype(x.dtype)


def init_critic_params(key, num_inputs, hidden_size, dtype=jnp.float32):
    """Deterministic init mimicking PyTorch nn.Linear default (U[-1/sqrt(fan_in), +])."""
    k1, k2, k3, k4 = jax.random.split(key, 4)
    bound1 = 1.0 / jnp.sqrt(jnp.float32(num_inputs))
    bound2 = 1.0 / jnp.sqrt(jnp.float32(hidden_size))
    # Stored as (in, out) so the math is x @ W directly.
    w1 = jax.random.uniform(k1, (num_inputs, hidden_size), dtype, -bound1, bound1)
    b1 = jax.random.uniform(k2, (1, hidden_size), dtype, -bound1, bound1)
    w2 = jax.random.uniform(k3, (hidden_size, 1), dtype, -bound2, bound2)
    b2 = jax.random.uniform(k4, (1, 1), dtype, -bound2, bound2)
    return w1, b1, w2, b2


if __name__ == "__main__":
    batch = 8
    num_inputs = 16
    hidden_size = 32

    key = jax.random.PRNGKey(0)
    kx, kp = jax.random.split(key)
    x = jax.random.normal(kx, (batch, num_inputs), jnp.float32)
    w1, b1, w2, b2 = init_critic_params(kp, num_inputs, hidden_size)

    value = critic_forward(x, w1, b1, w2, b2)
    jax.block_until_ready(value)

    # Reference with the same bf16 MXU operands / f32 accumulation and the
    # same f32 elementwise layer-2 reduction as the kernel.
    h_ref = jnp.maximum(
        jnp.dot(x.astype(jnp.bfloat16), w1.astype(jnp.bfloat16),
                preferred_element_type=jnp.float32) + b1, 0.0)
    ref = jnp.sum(h_ref * w2.reshape(1, hidden_size), axis=1, keepdims=True) + b2
    assert value.shape == (batch, 1)
    assert jnp.allclose(value, ref, atol=1e-3, rtol=1e-3), (
        float(jnp.max(jnp.abs(value - ref))))

    print("KERNEL_OK")
</pallas_src>

<mosaic_0001>
module attributes {stable_mosaic.version = 11 : i64} {
  func.func @critic_kernel(%arg0: i32, %arg1: memref<8x16xf32, #tpu.memory_space<vmem>>, %arg2: memref<16x32xbf16, #tpu.memory_space<vmem>>, %arg3: memref<1x32xf32, #tpu.memory_space<vmem>>, %arg4: memref<1x32xf32, #tpu.memory_space<vmem>>, %arg5: memref<1x1xf32, #tpu.memory_space<smem>>, %arg6: memref<8x1xf32, #tpu.memory_space<vmem>>) attributes {dimension_semantics = [#tpu.dimension_semantics<parallel>], iteration_bounds = array<i64: 1>, scalar_prefetch = 0 : i64, scratch_operands = 0 : i64, tpu.core_type = #tpu.core_type<tc>, window_params = [{transform_indices = @transform_0, window_bounds = array<i64: 8, 16>}, {pipeline_mode = #tpu.pipeline_mode<synchronous>, transform_indices = @transform_1, window_bounds = array<i64: 16, 32>}, {pipeline_mode = #tpu.pipeline_mode<synchronous>, transform_indices = @transform_2, window_bounds = array<i64: 1, 32>}, {pipeline_mode = #tpu.pipeline_mode<synchronous>, transform_indices = @transform_3, window_bounds = array<i64: 1, 32>}, {transform_indices = @transform_4, window_bounds = array<i64: 1, 1>}, {transform_indices = @transform_5, window_bounds = array<i64: 8, 1>}]} {
    %c0 = arith.constant 0 : index
    %c0_0 = arith.constant 0 : index
    %0 = vector.load %arg1[%c0, %c0_0] : memref<8x16xf32, #tpu.memory_space<vmem>>, vector<8x16xf32>
    %1 = arith.truncf %0 : vector<8x16xf32> to vector<8x16xbf16>
    %c0_1 = arith.constant 0 : index
    %c0_2 = arith.constant 0 : index
    %2 = vector.load %arg2[%c0_1, %c0_2] : memref<16x32xbf16, #tpu.memory_space<vmem>>, vector<16x32xbf16>
    %cst = arith.constant dense<0.000000e+00> : vector<8x32xf32>
    %3 = tpu.matmul %1, %2, %cst {dimension_numbers = #tpu.dot_dimension_numbers<[1], [0], [0], [1], [0, 0, 1, 1], [], []>} : vector<8x16xbf16>, vector<16x32xbf16>, vector<8x32xf32> -> vector<8x32xf32>
    %c0_3 = arith.constant 0 : index
    %c0_4 = arith.constant 0 : index
    %4 = vector.load %arg3[%c0_3, %c0_4] : memref<1x32xf32, #tpu.memory_space<vmem>>, vector<1x32xf32>
    %5 = vector.broadcast %4 : vector<1x32xf32> to vector<8x32xf32>
    %6 = arith.addf %3, %5 : vector<8x32xf32>
    %cst_5 = arith.constant 0.000000e+00 : f32
    %7 = vector.broadcast %cst_5 : f32 to vector<8x32xf32>
    %8 = arith.maximumf %6, %7 : vector<8x32xf32>
    %c0_6 = arith.constant 0 : index
    %c0_7 = arith.constant 0 : index
    %9 = vector.load %arg4[%c0_6, %c0_7] : memref<1x32xf32, #tpu.memory_space<vmem>>, vector<1x32xf32>
    %10 = vector.broadcast %9 : vector<1x32xf32> to vector<8x32xf32>
    %11 = arith.mulf %8, %10 : vector<8x32xf32>
    %cst_8 = arith.constant dense<0.000000e+00> : vector<8xf32>
    %12 = vector.multi_reduction <add>, %11, %cst_8 [1] : vector<8x32xf32> to vector<8xf32>
    %13 = vector.shape_cast %12 : vector<8xf32> to vector<8x1xf32>
    %c0_9 = arith.constant 0 : index
    %c0_10 = arith.constant 0 : index
    %14 = memref.load %arg5[%c0_9, %c0_10] : memref<1x1xf32, #tpu.memory_space<smem>>
    %15 = vector.broadcast %14 : f32 to vector<8x1xf32>
    %16 = arith.addf %13, %15 : vector<8x1xf32>
    %c0_11 = arith.constant 0 : index
    %c0_12 = arith.constant 0 : index
    %17 = vector.load %arg6[%c0_11, %c0_12] : memref<8x1xf32, #tpu.memory_space<vmem>>, vector<8x1xf32>
    tpu.vector_store %arg6[%c0_11, %c0_12], %16 {strides = array<i32>} : memref<8x1xf32, #tpu.memory_space<vmem>>, vector<8x1xf32>,
    return
  }
  func.func @transform_0(%arg0: i32) -> (i32, i32) {
    %c0_i32 = arith.constant 0 : i32
    %c0_i32_0 = arith.constant 0 : i32
    return %arg0, %c0_i32 : i32, i32
  }
  func.func @transform_1(%arg0: i32) -> (i32, i32) {
    %c0_i32 = arith.constant 0 : i32
    %c0_i32_0 = arith.constant 0 : i32
    %c0_i32_1 = arith.constant 0 : i32
    return %c0_i32, %c0_i32_0 : i32, i32
  }
  func.func @transform_2(%arg0: i32) -> (i32, i32) {
    %c0_i32 = arith.constant 0 : i32
    %c0_i32_0 = arith.constant 0 : i32
    %c0_i32_1 = arith.constant 0 : i32
    return %c0_i32, %c0_i32_0 : i32, i32
  }
  func.func @transform_3(%arg0: i32) -> (i32, i32) {
    %c0_i32 = arith.constant 0 : i32
    %c0_i32_0 = arith.constant 0 : i32
    %c0_i32_1 = arith.constant 0 : i32
    return %c0_i32, %c0_i32_0 : i32, i32
  }
  func.func @transform_4(%arg0: i32) -> (i32, i32) {
    %c0_i32 = arith.constant 0 : i32
    %c0_i32_0 = arith.constant 0 : i32
    %c0_i32_1 = arith.constant 0 : i32
    return %c0_i32, %c0_i32_0 : i32, i32
  }
  func.func @transform_5(%arg0: i32) -> (i32, i32) {
    %c0_i32 = arith.constant 0 : i32
    %c0_i32_0 = arith.constant 0 : i32
    return %arg0, %c0_i32 : i32, i32
  }
}

</mosaic_0001>

<bundles_post_ra>
// kernel: tpu_custom_call.1
= control target key start
LH: loop header
LB: loop body
LE: loop exit
PB: predicated region body
PF: predicated region fallthrough
CT: control target
= control target key end

     0   :  { %11 = vsyncpa [#allocation4], 0  ;;  %s279_s0 = inlined_call_operand.hbm [shape: f32[8,16], index: 0, kind: input, shape index: {}]   ;;  %s280_s1 = inlined_call_operand.hbm [shape: bf16[16,32], index: 1, kind: input, shape index: {}]   ;;  %s281_s2 = inlined_call_operand.vmem [shape: f32[1,32], index: 2, kind: input, shape index: {}]   ;;  %s282_s3 = inlined_call_operand.vmem [shape: f32[1,32], index: 3, kind: input, shape index: {}]   ;;  %s283_s4 = inlined_call_operand.<no memory space> [shape: f32[1,1], index: 4, kind: input, shape index: {}]   ;;  %s284_s5 = inlined_call_operand.vmem [shape: f32[8,1], index: 5, kind: output, shape index: {}]  }
   0x1   :  { %12 = vsyncpa [#allocation6], 0  ;;  %s200_s18 = smov [#allocation3]   ;;  %s201_s20 = smov [#allocation5]  }
   0x2   :  { %s19_s19 = sshll.u32 %s200_s18, 4  ;;  %s28_s21 = sshll.u32 %s201_s20, 4  ;;  %s20_s19 = int_to_ptr.vmem [resolvable:$true] %s19_s19  ;;  %s236_s21 = int_to_ptr.vmem [resolvable:$true] %s28_s21 }
   0x3   :  { %s152_s24 = scalar_lea.hbm %s279_s0, 128 }
   0x4   :  { %p153_p0 = scmp.ne.s32.totalorder %s279_s0, %s152_s24  ;;  %p156_p1 = scmp.lt.u32.totalorder %s152_s24, %s279_s0 }
   0x6   :  { %p158_p2 = pnand %p156_p1, %p153_p0 }
   0x8   :  { %161 = shalt.err (!%p158_p2)
}
   0x9   :  { %s162_s29 = scalar_lea.vmem %s20_s19, 128  ;;  %p167_p4 = scmp.lt.s32.totalorder %s20_s19, %s20_s19 }
   0xa   :  { %p163_p3 = scmp.ne.s32.totalorder %s20_s19, %s162_s29  ;;  %p168_p5 = scmp.lt.s32.totalorder %s162_s29, %s162_s29 }
   0xc   :  { %p169_p6 = por %p168_p5, %p167_p4 }
   0xe   :  { %p170_p7 = pnand %p169_p6, %p163_p3 }
  0x10   :  { %173 = shalt.err (!%p170_p7)
}
  0x11   :  { %22 = dma.hbm_to_vmem [thread:$0]  %s279_s0, 128, %s20_s19, [#allocation4]  }
  0x12   :  { %s174_s9 = scalar_lea.hbm %s280_s1, 128 }
  0x13   :  { %p175_p8 = scmp.ne.s32.totalorder %s280_s1, %s174_s9  ;;  %p178_p9 = scmp.lt.u32.totalorder %s174_s9, %s280_s1 }
  0x15   :  { %p180_p10 = pnand %p178_p9, %p175_p8 }
  0x17   :  { %183 = shalt.err (!%p180_p10)
}
  0x18   :  { %s184_s14 = scalar_lea.vmem %s236_s21, 128  ;;  %p189_p12 = scmp.lt.s32.totalorder %s236_s21, %s236_s21 }
  0x19   :  { %p185_p11 = scmp.ne.s32.totalorder %s236_s21, %s184_s14  ;;  %p190_p13 = scmp.lt.s32.totalorder %s184_s14, %s184_s14 }
  0x1b   :  { %p191_p0 = por %p190_p13, %p189_p12 }
  0x1d   :  { %p192_p1 = pnand %p191_p0, %p185_p11 }
  0x1f   :  { %195 = shalt.err (!%p192_p1)
}
  0x20   :  { %s202_s0 = smov 64   ;;  %s203_s15 = smov 4  }
  0x21   :  { %34 = dma.hbm_to_vmem [thread:$0]  %s280_s1, 128, %s236_s21, [#allocation6], %s202_s0, %s202_s0, %s203_s15  }
  0x22   :  { %196 = dma.done.wait [#allocation4], 128  }
  0x23   :  { %197 = vsyncadd [#allocation4], 4294967168 }
  0x24   :  { %198 = dma.done.wait [#allocation6], 128  }
  0x25   :  { %199 = vsyncadd [#allocation6], 4294967168  ;;  %v204_v0 = vmov 0.0   ;;  %vm205_vm0 = vmmov 0   ;;  %v151_v1 = vld [vmem:[#allocation5] sm:$0xff]   ;;  %v48_v2 = vld [vmem:[#allocation3] sm:$0xff]  ;;  %v123_v14 = vstv %s283_s4 }
  0x26   :  { %139 = vmatprep.subr.bf16.mxu0 %v204_v0  ;;  %141 = vmatprep.mubr.msk.bf16.mxu0 %vm205_vm0, %v204_v0  ;;  %v49_v3 = vpack.c.bf16 %v48_v2, %v48_v2  ;;  %vm65_vm1 = vcmask 130048   ;;  %v133_v4 = vld [vmem:[%s281_s2] ss:$0 sm:$0xff]  ;;  %vm118_vm2 = vcmask 261120   ;;  %vm125_vm3 = vcmask 7168  }
  0x27   :  { %140 = vmatpush3.bf16.msra.mxu0 %v151_v1  ;;  %v136_v9 = vld [vmem:[%s282_s3] ss:$0 sm:$0xff] }
  0x2a   :  { %142 = vmatmul.mubr.msk.bf16.vlgmr.msra.gmra.mrb[0].mxu0 %vm65_vm1, %v49_v3 }
  0xfd   :  { %v103_v5 = vpop.f32.mrb[0].mxu0 }
  0xfe   :  { %v104_v6 = vadd.f32 %v133_v4, %v103_v5  ;;  %v143_v7 = vpop.f32.mrb[1].mxu0 }
  0xff   :  { %v106_v8 = vpop.f32.mrb[2].mxu0 }
 0x100   :  { %v109_v10 = vmax.f32 %v104_v6, 0.0  ;;  %v144_v11 = vpop.f32.mrb[3].mxu0 }
 0x102   :  { %v117_v12 = vmul.f32 %v136_v9, %v109_v10 }
 0x104   :  { %v119_v13 = vsel %vm118_vm2, %v117_v12, 0.0 }
 0x105   :  { %120 = vadd.xlane.f32.xlu0 %v119_v13 }
 0x192   :  { %v121_v15 = vpop.xlane.xlu0 %120 }
 0x193   :  { %v124_v16 = vadd.f32 %v123_v14, %v121_v15 }
 0x195   :  { %126 = vst.msk [vmem:[%s284_s5] sm:$0xff] %vm125_vm3, %v124_v16 }
 0x196   :  { %131 = vsyncpa [#allocation4], 1 }
 0x197   :  { %132 = vsyncpa [#allocation6], 1 }

</bundles_post_ra>
